<compile_context>
chip_gen: v6e
topology: v6e:2x2x1
jax: 0.10.0
libtpu: 0.0.40
codegen_flags: <defaults>
</compile_context>

<pallas_src>
import jax
import jax.numpy as jnp
from jax.experimental import pallas as pl
from jax.experimental.pallas import tpu as pltpu


def _classifier_head_kernel(x_ref, w1_ref, b1_ref, w2_ref, b2_ref, out_ref):
    """One tile of packed rows: sigmoid(relu(x @ W1bd + b1) @ W2bd + b2)."""
    # Hidden layer: full-K MXU matmul, f32 accumulation regardless of x dtype.
    h = jnp.dot(x_ref[...], w1_ref[...], preferred_element_type=jnp.float32)   # (TR, P*H)
    h = jnp.maximum(h + b1_ref[...], 0.0)                                      # VPU bias+ReLU
    # Output head: block-diagonal column matrix -> P logits per packed row.
    logits = jnp.dot(h, w2_ref[...], preferred_element_type=jnp.float32)       # (TR, P)
    logits = logits + b2_ref[0, 0]                                             # SMEM scalar
    out_ref[...] = jax.nn.sigmoid(logits).astype(out_ref.dtype)                # EUP sigmoid
    # NOTE: the (TR, P) output store is only ~P/128 lane-dense, but output bytes
    # are <3% of streamed traffic in this HBM-bound kernel -> kept for safety.


def _vmem_capacity_bytes():
    try:
        return int(pltpu.get_tpu_info().vmem_capacity_bytes)
    except Exception:
        return 64 * 1024 * 1024   # conservative (v7x per-TC VMEM)


def _choose_block_b(batch, feat_dim, itemsize, pack):
    """Rows (original, un-packed) per tile: multiple of 8*pack, x tile ~4 MiB
    (generation-aware cap), and enough grid steps to pipeline / shard."""
    row_mult = 8 * pack                                    # sublane constraint after packing
    vmem_cap = _vmem_capacity_bytes()
    tile_budget = min(4 * 1024 * 1024, vmem_cap // 8)      # double-buffered x + headroom
    cap = max(row_mult, (tile_budget // (feat_dim * itemsize)) // row_mult * row_mult)
    # Aim for >= ~4 grid steps (>= 2 per v7x TensorCore) when the batch allows it.
    want = -(-batch // 4)
    want = max(row_mult, (want // row_mult) * row_mult)
    return max(row_mult, min(cap, want))


def _head_pallas(x2d, w1_bd, b1_t, w2_bd, b2_s, block_rows):
    """x2d: (R, Dp) packed rows with R % block_rows == 0.  Returns (R, P) f32."""
    R, Dp = x2d.shape
    Hp = w1_bd.shape[1]
    P = w2_bd.shape[1]
    num_tiles = R // block_rows
    itemsize = jnp.dtype(x2d.dtype).itemsize

    cost = pl.CostEstimate(
        flops=2 * R * Dp * Hp + 2 * R * Hp * P + 3 * R * Hp,
        transcendentals=R * P,
        bytes_accessed=(R * Dp * itemsize + Dp * Hp * itemsize
                        + Hp * 4 + Hp * P * 4 + 4 + R * P * 4),
    )
    vmem_limit = max(32 * 1024 * 1024, min(_vmem_capacity_bytes() // 2, 64 * 1024 * 1024))

    return pl.pallas_call(
        _classifier_head_kernel,
        out_shape=jax.ShapeDtypeStruct((R, P), jnp.float32),
        grid=(num_tiles,),
        in_specs=[
            pl.BlockSpec((block_rows, Dp), lambda i: (i, 0)),      # x tile (streamed, lane-dense)
            pl.BlockSpec((Dp, Hp), lambda i: (0, 0)),              # block-diag W1^T (resident)
            pl.BlockSpec((1, Hp), lambda i: (0, 0)),               # tiled b1 row (resident)
            pl.BlockSpec((Hp, P), lambda i: (0, 0)),               # block-diag w2 cols (resident)
            pl.BlockSpec(memory_space=pltpu.MemorySpace.SMEM),     # b2 scalar in SMEM
        ],
        out_specs=pl.BlockSpec((block_rows, P), lambda i: (i, 0)),
        compiler_params=pltpu.CompilerParams(
            dimension_semantics=("parallel",),      # shard batch tiles across TCs (v7x)
            vmem_limit_bytes=vmem_limit,            # generation-aware headroom
        ),
        cost_estimate=cost,
    )(x2d, w1_bd, b1_t, w2_bd, b2_s)


@jax.jit
def dl_model_forward(x, w1, b1, w2, b2):
    """x: (B, D) in f32 or bf16 (streamed as given; no wrapper cast).
    Weights in PyTorch nn.Linear convention: w1 (H, D), b1 (H,), w2 (1, H),
    b2 (1,).  Returns probabilities (B, 1) in f32."""
    B, D = x.shape
    H = w1.shape[0]
    itemsize = jnp.dtype(x.dtype).itemsize

    # Lane-dense pack factor: P consecutive rows share one 128-lane packed row.
    P = 128 // D if (D < 128 and 128 % D == 0) else 1

    # Layout plumbing (weights are tiny; built once, outside the kernel).
    eye_p = jnp.eye(P, dtype=jnp.float32)
    w1_bd = jnp.kron(eye_p, w1.T.astype(jnp.float32)).astype(x.dtype)     # (P*D, P*H)
    b1_t = jnp.tile(b1.astype(jnp.float32).reshape(1, H), (1, P))         # (1, P*H)
    w2_bd = jnp.kron(eye_p, w2.astype(jnp.float32).reshape(H, 1))         # (P*H, P)
    b2_s = b2.reshape(1, 1).astype(jnp.float32)                           # SMEM scalar

    block_b = _choose_block_b(B, D, itemsize, P)
    B_main = (B // block_b) * block_b

    pieces = []
    if B_main > 0:
        # Free row-major metadata reshape of the contiguous main slab (no pad copy).
        x_main = x[:B_main].reshape(B_main // P, P * D)
        pieces.append(_head_pallas(x_main, w1_bd, b1_t, w2_bd, b2_s, block_b // P))
    if B_main < B:
        # Only the small ragged tail is padded (single extra tile), never all of x.
        tail_rows = B - B_main
        row_mult = 8 * P
        tail_pad = -(-tail_rows // row_mult) * row_mult
        x_tail = jnp.pad(x[B_main:], ((0, tail_pad - tail_rows), (0, 0)))
        x_tail = x_tail.reshape(tail_pad // P, P * D)
        pieces.append(_head_pallas(x_tail, w1_bd, b1_t, w2_bd, b2_s, tail_pad // P))

    out = jnp.concatenate(pieces, axis=0) if len(pieces) > 1 else pieces[0]
    return out.reshape(-1, 1)[:B]                                          # (B, 1)


def init_params(key, latent_dim, hidden_dim):
    """Deterministic parameter init (PyTorch nn.Linear convention: W is [out, in])."""
    k1, k2, k3, k4 = jax.random.split(key, 4)
    lim1 = 1.0 / jnp.sqrt(latent_dim)
    lim2 = 1.0 / jnp.sqrt(hidden_dim)
    w1 = jax.random.uniform(k1, (hidden_dim, latent_dim), jnp.float32, -lim1, lim1)
    b1 = jax.random.uniform(k2, (hidden_dim,), jnp.float32, -lim1, lim1)
    w2 = jax.random.uniform(k3, (1, hidden_dim), jnp.float32, -lim2, lim2)
    b2 = jax.random.uniform(k4, (1,), jnp.float32, -lim2, lim2)
    return w1, b1, w2, b2


def reference_forward(x, w1, b1, w2, b2):
    h = jnp.maximum(x.astype(jnp.float32) @ w1.T + b1, 0.0)
    return jax.nn.sigmoid(h @ w2.T + b2)


if __name__ == "__main__":
    batch = 203          # not a multiple of any tile -> exercises the ragged-tail path
    latent_dim = 32
    hidden_dim = 32

    key = jax.random.PRNGKey(0)
    k_x, k_p = jax.random.split(key)
    x = jax.random.normal(k_x, (batch, latent_dim), jnp.float32)
    w1, b1, w2, b2 = init_params(k_p, latent_dim, hidden_dim)

    out = dl_model_forward(x, w1, b1, w2, b2)
    out = jax.block_until_ready(out)

    ref = reference_forward(x, w1, b1, w2, b2)
    assert out.shape == (batch, 1), out.shape
    assert jnp.allclose(out, ref, atol=2e-5, rtol=2e-5), "mismatch vs reference"

    print("KERNEL_OK")
</pallas_src>

<mosaic_0001>
module attributes {stable_mosaic.version = 11 : i64} {
  func.func @_classifier_head_kernel(%arg0: i32, %arg1: memref<8x128xf32, #tpu.memory_space<vmem>>, %arg2: memref<128x128xf32, #tpu.memory_space<vmem>>, %arg3: memref<1x128xf32, #tpu.memory_space<vmem>>, %arg4: memref<128x4xf32, #tpu.memory_space<vmem>>, %arg5: memref<1x1xf32, #tpu.memory_space<smem>>, %arg6: memref<8x4xf32, #tpu.memory_space<vmem>>) attributes {dimension_semantics = [#tpu.dimension_semantics<parallel>], iteration_bounds = array<i64: 6>, scalar_prefetch = 0 : i64, scratch_operands = 0 : i64, tpu.core_type = #tpu.core_type<tc>, window_params = [{transform_indices = @transform_0, window_bounds = array<i64: 8, 128>}, {pipeline_mode = #tpu.pipeline_mode<synchronous>, transform_indices = @transform_1, window_bounds = array<i64: 128, 128>}, {pipeline_mode = #tpu.pipeline_mode<synchronous>, transform_indices = @transform_2, window_bounds = array<i64: 1, 128>}, {pipeline_mode = #tpu.pipeline_mode<synchronous>, transform_indices = @transform_3, window_bounds = array<i64: 128, 4>}, {transform_indices = @transform_4, window_bounds = array<i64: 1, 1>}, {transform_indices = @transform_5, window_bounds = array<i64: 8, 4>}]} {
    %c0 = arith.constant 0 : index
    %c0_0 = arith.constant 0 : index
    %0 = vector.load %arg1[%c0, %c0_0] : memref<8x128xf32, #tpu.memory_space<vmem>>, vector<8x128xf32>
    %c0_1 = arith.constant 0 : index
    %c0_2 = arith.constant 0 : index
    %1 = vector.load %arg2[%c0_1, %c0_2] : memref<128x128xf32, #tpu.memory_space<vmem>>, vector<128x128xf32>
    %cst = arith.constant dense<0.000000e+00> : vector<8x128xf32>
    %2 = tpu.matmul %0, %1, %cst {dimension_numbers = #tpu.dot_dimension_numbers<[1], [0], [0], [1], [0, 0, 1, 1], [], []>} : vector<8x128xf32>, vector<128x128xf32>, vector<8x128xf32> -> vector<8x128xf32>
    %c0_3 = arith.constant 0 : index
    %c0_4 = arith.constant 0 : index
    %3 = vector.load %arg3[%c0_3, %c0_4] : memref<1x128xf32, #tpu.memory_space<vmem>>, vector<1x128xf32>
    %4 = vector.broadcast %3 : vector<1x128xf32> to vector<8x128xf32>
    %5 = arith.addf %2, %4 : vector<8x128xf32>
    %cst_5 = arith.constant 0.000000e+00 : f32
    %6 = vector.broadcast %cst_5 : f32 to vector<8x128xf32>
    %7 = arith.maximumf %5, %6 : vector<8x128xf32>
    %c0_6 = arith.constant 0 : index
    %c0_7 = arith.constant 0 : index
    %8 = vector.load %arg4[%c0_6, %c0_7] : memref<128x4xf32, #tpu.memory_space<vmem>>, vector<128x4xf32>
    %cst_8 = arith.constant dense<0.000000e+00> : vector<8x4xf32>
    %9 = tpu.matmul %7, %8, %cst_8 {dimension_numbers = #tpu.dot_dimension_numbers<[1], [0], [0], [1], [0, 0, 1, 1], [], []>} : vector<8x128xf32>, vector<128x4xf32>, vector<8x4xf32> -> vector<8x4xf32>
    %c0_9 = arith.constant 0 : index
    %c0_10 = arith.constant 0 : index
    %10 = memref.load %arg5[%c0_9, %c0_10] : memref<1x1xf32, #tpu.memory_space<smem>>
    %11 = vector.broadcast %10 : f32 to vector<8x4xf32>
    %12 = arith.addf %9, %11 : vector<8x4xf32>
    %13 = arith.negf %12 : vector<8x4xf32>
    %14 = math.exp %13 : vector<8x4xf32>
    %cst_11 = arith.constant 1.000000e+00 : f32
    %15 = vector.broadcast %cst_11 : f32 to vector<8x4xf32>
    %16 = arith.addf %15, %14 : vector<8x4xf32>
    %17 = arith.divf %15, %16 : vector<8x4xf32>
    %c0_12 = arith.constant 0 : index
    %c0_13 = arith.constant 0 : index
    %18 = vector.load %arg6[%c0_12, %c0_13] : memref<8x4xf32, #tpu.memory_space<vmem>>, vector<8x4xf32>
    tpu.vector_store %arg6[%c0_12, %c0_13], %17 {strides = array<i32>} : memref<8x4xf32, #tpu.memory_space<vmem>>, vector<8x4xf32>,
    return
  }
  func.func @transform_0(%arg0: i32) -> (i32, i32) {
    %c0_i32 = arith.constant 0 : i32
    %c0_i32_0 = arith.constant 0 : i32
    return %arg0, %c0_i32 : i32, i32
  }
  func.func @transform_1(%arg0: i32) -> (i32, i32) {
    %c0_i32 = arith.constant 0 : i32
    %c0_i32_0 = arith.constant 0 : i32
    %c0_i32_1 = arith.constant 0 : i32
    return %c0_i32, %c0_i32_0 : i32, i32
  }
  func.func @transform_2(%arg0: i32) -> (i32, i32) {
    %c0_i32 = arith.constant 0 : i32
    %c0_i32_0 = arith.constant 0 : i32
    %c0_i32_1 = arith.constant 0 : i32
    return %c0_i32, %c0_i32_0 : i32, i32
  }
  func.func @transform_3(%arg0: i32) -> (i32, i32) {
    %c0_i32 = arith.constant 0 : i32
    %c0_i32_0 = arith.constant 0 : i32
    %c0_i32_1 = arith.constant 0 : i32
    return %c0_i32, %c0_i32_0 : i32, i32
  }
  func.func @transform_4(%arg0: i32) -> (i32, i32) {
    %c0_i32 = arith.constant 0 : i32
    %c0_i32_0 = arith.constant 0 : i32
    %c0_i32_1 = arith.constant 0 : i32
    return %c0_i32, %c0_i32_0 : i32, i32
  }
  func.func @transform_5(%arg0: i32) -> (i32, i32) {
    %c0_i32 = arith.constant 0 : i32
    %c0_i32_0 = arith.constant 0 : i32
    return %arg0, %c0_i32 : i32, i32
  }
}

module attributes {stable_mosaic.version = 11 : i64} {
  func.func @_classifier_head_kernel(%arg0: i32, %arg1: memref<8x128xf32, #tpu.memory_space<vmem>>, %arg2: memref<128x128xf32, #tpu.memory_space<vmem>>, %arg3: memref<1x128xf32, #tpu.memory_space<vmem>>, %arg4: memref<128x4xf32, #tpu.memory_space<vmem>>, %arg5: memref<1x1xf32, #tpu.memory_space<smem>>, %arg6: memref<8x4xf32, #tpu.memory_space<vmem>>) attributes {dimension_semantics = [#tpu.dimension_semantics<parallel>], iteration_bounds = array<i64: 1>, scalar_prefetch = 0 : i64, scratch_operands = 0 : i64, tpu.core_type = #tpu.core_type<tc>, window_params = [{transform_indices = @transform_0, window_bounds = array<i64: 8, 128>}, {pipeline_mode = #tpu.pipeline_mode<synchronous>, transform_indices = @transform_1, window_bounds = array<i64: 128, 128>}, {pipeline_mode = #tpu.pipeline_mode<synchronous>, transform_indices = @transform_2, window_bounds = array<i64: 1, 128>}, {pipeline_mode = #tpu.pipeline_mode<synchronous>, transform_indices = @transform_3, window_bounds = array<i64: 128, 4>}, {transform_indices = @transform_4, window_bounds = array<i64: 1, 1>}, {transform_indices = @transform_5, window_bounds = array<i64: 8, 4>}]} {
    %c0 = arith.constant 0 : index
    %c0_0 = arith.constant 0 : index
    %0 = vector.load %arg1[%c0, %c0_0] : memref<8x128xf32, #tpu.memory_space<vmem>>, vector<8x128xf32>
    %c0_1 = arith.constant 0 : index
    %c0_2 = arith.constant 0 : index
    %1 = vector.load %arg2[%c0_1, %c0_2] : memref<128x128xf32, #tpu.memory_space<vmem>>, vector<128x128xf32>
    %cst = arith.constant dense<0.000000e+00> : vector<8x128xf32>
    %2 = tpu.matmul %0, %1, %cst {dimension_numbers = #tpu.dot_dimension_numbers<[1], [0], [0], [1], [0, 0, 1, 1], [], []>} : vector<8x128xf32>, vector<128x128xf32>, vector<8x128xf32> -> vector<8x128xf32>
    %c0_3 = arith.constant 0 : index
    %c0_4 = arith.constant 0 : index
    %3 = vector.load %arg3[%c0_3, %c0_4] : memref<1x128xf32, #tpu.memory_space<vmem>>, vector<1x128xf32>
    %4 = vector.broadcast %3 : vector<1x128xf32> to vector<8x128xf32>
    %5 = arith.addf %2, %4 : vector<8x128xf32>
    %cst_5 = arith.constant 0.000000e+00 : f32
    %6 = vector.broadcast %cst_5 : f32 to vector<8x128xf32>
    %7 = arith.maximumf %5, %6 : vector<8x128xf32>
    %c0_6 = arith.constant 0 : index
    %c0_7 = arith.constant 0 : index
    %8 = vector.load %arg4[%c0_6, %c0_7] : memref<128x4xf32, #tpu.memory_space<vmem>>, vector<128x4xf32>
    %cst_8 = arith.constant dense<0.000000e+00> : vector<8x4xf32>
    %9 = tpu.matmul %7, %8, %cst_8 {dimension_numbers = #tpu.dot_dimension_numbers<[1], [0], [0], [1], [0, 0, 1, 1], [], []>} : vector<8x128xf32>, vector<128x4xf32>, vector<8x4xf32> -> vector<8x4xf32>
    %c0_9 = arith.constant 0 : index
    %c0_10 = arith.constant 0 : index
    %10 = memref.load %arg5[%c0_9, %c0_10] : memref<1x1xf32, #tpu.memory_space<smem>>
    %11 = vector.broadcast %10 : f32 to vector<8x4xf32>
    %12 = arith.addf %9, %11 : vector<8x4xf32>
    %13 = arith.negf %12 : vector<8x4xf32>
    %14 = math.exp %13 : vector<8x4xf32>
    %cst_11 = arith.constant 1.000000e+00 : f32
    %15 = vector.broadcast %cst_11 : f32 to vector<8x4xf32>
    %16 = arith.addf %15, %14 : vector<8x4xf32>
    %17 = arith.divf %15, %16 : vector<8x4xf32>
    %c0_12 = arith.constant 0 : index
    %c0_13 = arith.constant 0 : index
    %18 = vector.load %arg6[%c0_12, %c0_13] : memref<8x4xf32, #tpu.memory_space<vmem>>, vector<8x4xf32>
    tpu.vector_store %arg6[%c0_12, %c0_13], %17 {strides = array<i32>} : memref<8x4xf32, #tpu.memory_space<vmem>>, vector<8x4xf32>,
    return
  }
  func.func @transform_0(%arg0: i32) -> (i32, i32) {
    %c0_i32 = arith.constant 0 : i32
    %c0_i32_0 = arith.constant 0 : i32
    return %arg0, %c0_i32 : i32, i32
  }
  func.func @transform_1(%arg0: i32) -> (i32, i32) {
    %c0_i32 = arith.constant 0 : i32
    %c0_i32_0 = arith.constant 0 : i32
    %c0_i32_1 = arith.constant 0 : i32
    return %c0_i32, %c0_i32_0 : i32, i32
  }
  func.func @transform_2(%arg0: i32) -> (i32, i32) {
    %c0_i32 = arith.constant 0 : i32
    %c0_i32_0 = arith.constant 0 : i32
    %c0_i32_1 = arith.constant 0 : i32
    return %c0_i32, %c0_i32_0 : i32, i32
  }
  func.func @transform_3(%arg0: i32) -> (i32, i32) {
    %c0_i32 = arith.constant 0 : i32
    %c0_i32_0 = arith.constant 0 : i32
    %c0_i32_1 = arith.constant 0 : i32
    return %c0_i32, %c0_i32_0 : i32, i32
  }
  func.func @transform_4(%arg0: i32) -> (i32, i32) {
    %c0_i32 = arith.constant 0 : i32
    %c0_i32_0 = arith.constant 0 : i32
    %c0_i32_1 = arith.constant 0 : i32
    return %c0_i32, %c0_i32_0 : i32, i32
  }
  func.func @transform_5(%arg0: i32) -> (i32, i32) {
    %c0_i32 = arith.constant 0 : i32
    %c0_i32_0 = arith.constant 0 : i32
    return %arg0, %c0_i32 : i32, i32
  }
}

</mosaic_0001>

<bundles_post_ra>
// kernel: dl_model_forward.2
= control target key start
LH: loop header
LB: loop body
LE: loop exit
PB: predicated region body
PF: predicated region fallthrough
CT: control target
= control target key end

     0   :  { %s637_s20 = smov 0   ;;  %s798_s0 = inlined_call_operand.vmem [shape: f32[48,128], index: 0, kind: input, shape index: {}]   ;;  %s799_s1 = inlined_call_operand.vmem [shape: f32[128,128], index: 1, kind: input, shape index: {}]   ;;  %s800_s2 = inlined_call_operand.vmem [shape: f32[1,128], index: 2, kind: input, shape index: {}]   ;;  %s801_s3 = inlined_call_operand.vmem [shape: f32[128,4], index: 3, kind: input, shape index: {}]   ;;  %s802_s4 = inlined_call_operand.<no memory space> [shape: f32[1,1], index: 4, kind: input, shape index: {}]   ;;  %s803_s5 = inlined_call_operand.vmem [shape: f32[48,4], index: 5, kind: output, shape index: {}]  }
   0x1   :  { %10 = sst [smem:[#allocation2]] %s802_s4 }
   0x2 LB: > { %s465_s21 = sadd.s32 4294967295, %s600_s20   ;;  %p469_p0 = scmp.ge.s32.totalorder %s600_s20, 1  ;;  %s600_s20 = sphi %s637_s20, %s16_s20  }
   0x3   : > { %p187_p1 = scmp.lt.s32.totalorder %s600_s20, 7 }
   0x5   : > { %p188_p2 = pnand %p469_p0, %p187_p1 }
   0x6   : > { %p213_p3 = scmp.lt.s32.totalorder (!%p188_p2), %s465_s21, 5  ;;  %s332_s18 = sld [smem:[#allocation2]] (!%p188_p2) }
   0x7   : > { %191 = sbr.rel (%p188_p2) target bundleno = 470 (0x1d6), region = 40 }
   0xc   : > { %v237_v0 = vld [vmem:[%s799_s1 + $0x78] sm:$0xff]  ;;  %v602_v1 = vmov 0.0   ;;  %v236_v2 = vld [vmem:[%s799_s1 + $0x70] sm:$0xff]  ;;  %vm603_vm0 = vmmov 0   ;;  %v235_v3 = vld [vmem:[%s799_s1 + $0x68] sm:$0xff]  ;;  %s805_s21 = smov (!%p213_p3, %s465_s21), 5  ;;  %v333_v39 = vstv %s332_s18 }
   0xd   : > { %510 = vmatprep.subr.mxu0 %v602_v1  ;;  %542 = vmatprep.mubr.msk.f32.mxu0 %vm603_vm0, %v602_v1  ;;  %v234_v4 = vld [vmem:[%s799_s1 + $0x60] sm:$0xff]  ;;  %v331_v5 = vld [vmem:[%s801_s3 + $0x78] sm:$0xff]  ;;  %v330_v6 = vld [vmem:[%s801_s3 + $0x70] sm:$0xff]  ;;  %s470_s22 = sshll.u32 %s805_s21, 3  ;;  %vm410_vm1 = vcmask 31744  }
   0xe   : > { %511 = vmatpush3.msra.mxu0 %v237_v0  ;;  %545 = vmatprep.subr.mxu1 %v602_v1  ;;  %v233_v7 = vld [vmem:[%s799_s1 + $0x58] sm:$0xff]  ;;  %v329_v8 = vld [vmem:[%s801_s3 + $0x68] sm:$0xff]  ;;  %v232_v9 = vld [vmem:[%s799_s1 + $0x50] sm:$0xff]  ;;  %s216_s30 = scalar_lea.vmem %s798_s0, %s470_s22  ;;  %s220_s4 = scalar_lea.vmem %s803_s5, %s470_s22 }
   0xf   : > { %512 = vmatprep.subr.mxu0 %v602_v1  ;;  %577 = vmatprep.mubr.msk.f32.mxu1 %vm603_vm0, %v602_v1  ;;  %v328_v10 = vld [vmem:[%s801_s3 + $0x60] sm:$0xff]  ;;  %v231_v11 = vld [vmem:[%s799_s1 + $0x48] sm:$0xff]  ;;  %v327_v12 = vld [vmem:[%s801_s3 + $0x58] sm:$0xff] }
  0x10   : > { %513 = vmatpush3.msra.mxu0 %v236_v2  ;;  %546 = vmatpush3.msra.mxu1 %v331_v5  ;;  %v230_v13 = vld [vmem:[%s799_s1 + $0x40] sm:$0xff]  ;;  %v326_v14 = vld [vmem:[%s801_s3 + $0x50] sm:$0xff]  ;;  %v229_v15 = vld [vmem:[%s799_s1 + $0x38] sm:$0xff] }
  0x11   : > { %514 = vmatprep.subr.mxu0 %v602_v1  ;;  %547 = vmatprep.subr.mxu1 %v602_v1  ;;  %v325_v16 = vld [vmem:[%s801_s3 + $0x48] sm:$0xff]  ;;  %v228_v17 = vld [vmem:[%s799_s1 + $0x30] sm:$0xff]  ;;  %v324_v18 = vld [vmem:[%s801_s3 + $0x40] sm:$0xff] }
  0x12   : > { %515 = vmatpush3.msra.mxu0 %v235_v3  ;;  %548 = vmatpush3.msra.mxu1 %v330_v6  ;;  %v227_v19 = vld [vmem:[%s799_s1 + $0x28] sm:$0xff]  ;;  %v323_v20 = vld [vmem:[%s801_s3 + $0x38] sm:$0xff]  ;;  %v226_v21 = vld [vmem:[%s799_s1 + $0x20] sm:$0xff] }
  0x13   : > { %516 = vmatprep.subr.mxu0 %v602_v1  ;;  %549 = vmatprep.subr.mxu1 %v602_v1  ;;  %v322_v22 = vld [vmem:[%s801_s3 + $0x30] sm:$0xff]  ;;  %v225_v23 = vld [vmem:[%s799_s1 + $0x18] sm:$0xff]  ;;  %v321_v24 = vld [vmem:[%s801_s3 + $0x28] sm:$0xff] }
  0x14   : > { %517 = vmatpush3.msra.mxu0 %v234_v4  ;;  %550 = vmatpush3.msra.mxu1 %v329_v8  ;;  %v224_v25 = vld [vmem:[%s799_s1 + $0x10] sm:$0xff]  ;;  %v320_v26 = vld [vmem:[%s801_s3 + $0x20] sm:$0xff]  ;;  %v223_v27 = vld [vmem:[%s799_s1 + $0x8] sm:$0xff] }
  0x15   : > { %518 = vmatprep.subr.mxu0 %v602_v1  ;;  %551 = vmatprep.subr.mxu1 %v602_v1  ;;  %v319_v28 = vld [vmem:[%s801_s3 + $0x18] sm:$0xff]  ;;  %v222_v29 = vld [vmem:[%s799_s1] sm:$0xff]  ;;  %v318_v31 = vld [vmem:[%s801_s3 + $0x10] sm:$0xff] }
  0x16   : > { %519 = vmatpush3.msra.mxu0 %v233_v7  ;;  %552 = vmatpush3.msra.mxu1 %v328_v10  ;;  %v221_v30 = vld [vmem:[%s216_s30] sm:$0xff]  ;;  %v317_v32 = vld [vmem:[%s801_s3 + $0x8] sm:$0xff] }
  0x17   : > { %520 = vmatprep.subr.mxu0 %v602_v1  ;;  %553 = vmatprep.subr.mxu1 %v602_v1  ;;  %v316_v33 = vld [vmem:[%s801_s3] sm:$0xff] }
  0x18   : > { %521 = vmatpush3.msra.mxu0 %v232_v9  ;;  %554 = vmatpush3.msra.mxu1 %v327_v12  ;;  %v472_v34 = vld [vmem:[%s800_s2] ss:$0 sm:$0xff] }
  0x19   : > { %522 = vmatprep.subr.mxu0 %v602_v1  ;;  %555 = vmatprep.subr.mxu1 %v602_v1 }
  0x1a   : > { %523 = vmatpush3.msra.mxu0 %v231_v11  ;;  %556 = vmatpush3.msra.mxu1 %v326_v14 }
  0x1b   : > { %524 = vmatprep.subr.mxu0 %v602_v1  ;;  %557 = vmatprep.subr.mxu1 %v602_v1 }
  0x1c   : > { %525 = vmatpush3.msra.mxu0 %v230_v13  ;;  %558 = vmatpush3.msra.mxu1 %v325_v16 }
  0x1d   : > { %526 = vmatprep.subr.mxu0 %v602_v1  ;;  %559 = vmatprep.subr.mxu1 %v602_v1 }
  0x1e   : > { %527 = vmatpush3.msra.mxu0 %v229_v15  ;;  %560 = vmatpush3.msra.mxu1 %v324_v18 }
  0x1f   : > { %528 = vmatprep.subr.mxu0 %v602_v1  ;;  %561 = vmatprep.subr.mxu1 %v602_v1 }
  0x20   : > { %529 = vmatpush3.msra.mxu0 %v228_v17  ;;  %562 = vmatpush3.msra.mxu1 %v323_v20 }
  0x21   : > { %530 = vmatprep.subr.mxu0 %v602_v1  ;;  %563 = vmatprep.subr.mxu1 %v602_v1 }
  0x22   : > { %531 = vmatpush3.msra.mxu0 %v227_v19  ;;  %564 = vmatpush3.msra.mxu1 %v322_v22 }
  0x23   : > { %532 = vmatprep.subr.mxu0 %v602_v1  ;;  %565 = vmatprep.subr.mxu1 %v602_v1 }
  0x24   : > { %533 = vmatpush3.msra.mxu0 %v226_v21  ;;  %566 = vmatpush3.msra.mxu1 %v321_v24 }
  0x25   : > { %534 = vmatprep.subr.mxu0 %v602_v1  ;;  %567 = vmatprep.subr.mxu1 %v602_v1 }
  0x26   : > { %535 = vmatpush3.msra.mxu0 %v225_v23  ;;  %568 = vmatpush3.msra.mxu1 %v320_v26 }
  0x27   : > { %536 = vmatprep.subr.mxu0 %v602_v1  ;;  %569 = vmatprep.subr.mxu1 %v602_v1 }
  0x28   : > { %537 = vmatpush3.msra.mxu0 %v224_v25  ;;  %570 = vmatpush3.msra.mxu1 %v319_v28 }
  0x29   : > { %538 = vmatprep.subr.mxu0 %v602_v1  ;;  %571 = vmatprep.subr.mxu1 %v602_v1 }
  0x2a   : > { %539 = vmatpush3.msra.mxu0 %v223_v27  ;;  %572 = vmatpush3.msra.mxu1 %v318_v31 }
  0x2b   : > { %540 = vmatprep.subr.mxu0 %v602_v1  ;;  %573 = vmatprep.subr.mxu1 %v602_v1 }
  0x2c   : > { %541 = vmatpush3.msra.mxu0 %v222_v29  ;;  %574 = vmatpush3.msra.mxu1 %v317_v32 }
  0x2d   : > { %543 = vmatmul.mubr.f32.vlgmr.msra.gmra.mxu0 %v221_v30  ;;  %575 = vmatprep.subr.mxu1 %v602_v1 }
  0x2e   : > { %576 = vmatpush3.msra.mxu1 %v316_v33 }
  0xed   : > { %v311_v35 = vpop.f32.mrf.mxu0 }
  0xee   : > { %v312_v36 = vadd.f32 %v472_v34, %v311_v35 }
  0xef   : > { %v544_v37 = vpop.f32.mrf.mxu0 }
  0xf0   : > { %v315_v38 = vmax.f32 %v312_v36, 0.0 }
  0xf2   : > { %578 = vmatmul.mubr.f32.vlgmr.msra.gmra.mxu1 %v315_v38 }
 0x1b2   : > { %v400_v40 = vpop.f32.mrf.mxu1 }
 0x1b3   : > { %v401_v41 = vadd.f32 %v400_v40, %v333_v39 }
 0x1b4   : > { %v579_v42 = vpop.f32.mrf.mxu1 }
 0x1b5   : > { %v473_v43 = vmul.f32 -1.442695, %v401_v41 }
 0x1b7   : > { %590 = vpow2.f32 %v473_v43 }
 0x1c4   : > { %v591_v44 = vpop.eup %590 }
 0x1c5   : > { %v407_v45 = vadd.f32 1.0, %v591_v44 }
 0x1c7   : > { %592 = vrcp.f32 %v407_v45 }
 0x1d4   : > { %v593_v46 = vpop.eup %592 }
 0x1d5   : > { %411 = vst.msk [vmem:[%s220_s4] sm:$0xff] %vm410_vm1, %v593_v46 }
 0x1d6 PF: > { %s16_s20 = sadd.s32 1, %s600_s20  }
 0x1d7   : > { %p13_p4 = scmp.ge.s32.totalorder %s16_s20, 8  }
 0x1d9   :  { %15 = sbr.rel (!%p13_p4) target bundleno = 2 (0x2), region = 70 }

// kernel: dl_model_forward.3
= control target key start
LH: loop header
LB: loop body
LE: loop exit
PB: predicated region body
PF: predicated region fallthrough
CT: control target
= control target key end

     0   :  { %v328_v0 = vmov 0.0   ;;  %vm329_vm0 = vmmov 0   ;;  %vm210_vm1 = vcmask 31744   ;;  %s502_s1 = inlined_call_operand.vmem [shape: f32[128,128], index: 1, kind: input, shape index: {}]   ;;  %s503_s3 = inlined_call_operand.vmem [shape: f32[128,4], index: 3, kind: input, shape index: {}]   ;;  %s504_s0 = inlined_call_operand.vmem [shape: f32[8,128], index: 0, kind: input, shape index: {}]   ;;  %s505_s2 = inlined_call_operand.vmem [shape: f32[1,128], index: 2, kind: input, shape index: {}]   ;;  %s506_s4 = inlined_call_operand.<no memory space> [shape: f32[1,1], index: 4, kind: input, shape index: {}]   ;;  %s507_s5 = inlined_call_operand.vmem [shape: f32[8,4], index: 5, kind: output, shape index: {}]  }
   0x1   :  { %252 = vmatprep.subr.mxu0 %v328_v0  ;;  %v37_v1 = vld [vmem:[%s502_s1 + $0x78] sm:$0xff]  ;;  %v36_v2 = vld [vmem:[%s502_s1 + $0x70] sm:$0xff]  ;;  %284 = vmatprep.mubr.msk.f32.mxu0 %vm329_vm0, %v328_v0  ;;  %v35_v3 = vld [vmem:[%s502_s1 + $0x68] sm:$0xff]  ;;  %v133_v39 = vstv %s506_s4 }
   0x2   :  { %253 = vmatpush3.msra.mxu0 %v37_v1  ;;  %287 = vmatprep.subr.mxu1 %v328_v0  ;;  %v34_v4 = vld [vmem:[%s502_s1 + $0x60] sm:$0xff]  ;;  %v131_v5 = vld [vmem:[%s503_s3 + $0x78] sm:$0xff]  ;;  %v130_v7 = vld [vmem:[%s503_s3 + $0x70] sm:$0xff] }
   0x3   :  { %254 = vmatprep.subr.mxu0 %v328_v0  ;;  %319 = vmatprep.mubr.msk.f32.mxu1 %vm329_vm0, %v328_v0  ;;  %v33_v6 = vld [vmem:[%s502_s1 + $0x58] sm:$0xff]  ;;  %v129_v8 = vld [vmem:[%s503_s3 + $0x68] sm:$0xff]  ;;  %v32_v9 = vld [vmem:[%s502_s1 + $0x50] sm:$0xff] }
   0x4   :  { %255 = vmatpush3.msra.mxu0 %v36_v2  ;;  %288 = vmatpush3.msra.mxu1 %v131_v5  ;;  %v128_v10 = vld [vmem:[%s503_s3 + $0x60] sm:$0xff]  ;;  %v31_v11 = vld [vmem:[%s502_s1 + $0x48] sm:$0xff]  ;;  %v127_v12 = vld [vmem:[%s503_s3 + $0x58] sm:$0xff] }
   0x5   :  { %256 = vmatprep.subr.mxu0 %v328_v0  ;;  %289 = vmatprep.subr.mxu1 %v328_v0  ;;  %v30_v13 = vld [vmem:[%s502_s1 + $0x40] sm:$0xff]  ;;  %v126_v14 = vld [vmem:[%s503_s3 + $0x50] sm:$0xff]  ;;  %v29_v15 = vld [vmem:[%s502_s1 + $0x38] sm:$0xff] }
   0x6   :  { %257 = vmatpush3.msra.mxu0 %v35_v3  ;;  %290 = vmatpush3.msra.mxu1 %v130_v7  ;;  %v125_v16 = vld [vmem:[%s503_s3 + $0x48] sm:$0xff]  ;;  %v28_v17 = vld [vmem:[%s502_s1 + $0x30] sm:$0xff]  ;;  %v124_v18 = vld [vmem:[%s503_s3 + $0x40] sm:$0xff] }
   0x7   :  { %258 = vmatprep.subr.mxu0 %v328_v0  ;;  %291 = vmatprep.subr.mxu1 %v328_v0  ;;  %v27_v19 = vld [vmem:[%s502_s1 + $0x28] sm:$0xff]  ;;  %v123_v20 = vld [vmem:[%s503_s3 + $0x38] sm:$0xff]  ;;  %v26_v21 = vld [vmem:[%s502_s1 + $0x20] sm:$0xff] }
   0x8   :  { %259 = vmatpush3.msra.mxu0 %v34_v4  ;;  %292 = vmatpush3.msra.mxu1 %v129_v8  ;;  %v122_v22 = vld [vmem:[%s503_s3 + $0x30] sm:$0xff]  ;;  %v25_v23 = vld [vmem:[%s502_s1 + $0x18] sm:$0xff]  ;;  %v121_v24 = vld [vmem:[%s503_s3 + $0x28] sm:$0xff] }
   0x9   :  { %260 = vmatprep.subr.mxu0 %v328_v0  ;;  %293 = vmatprep.subr.mxu1 %v328_v0  ;;  %v24_v25 = vld [vmem:[%s502_s1 + $0x10] sm:$0xff]  ;;  %v120_v26 = vld [vmem:[%s503_s3 + $0x20] sm:$0xff]  ;;  %v23_v27 = vld [vmem:[%s502_s1 + $0x8] sm:$0xff] }
   0xa   :  { %261 = vmatpush3.msra.mxu0 %v33_v6  ;;  %294 = vmatpush3.msra.mxu1 %v128_v10  ;;  %v119_v28 = vld [vmem:[%s503_s3 + $0x18] sm:$0xff]  ;;  %v22_v29 = vld [vmem:[%s502_s1] sm:$0xff]  ;;  %v118_v31 = vld [vmem:[%s503_s3 + $0x10] sm:$0xff] }
   0xb   :  { %262 = vmatprep.subr.mxu0 %v328_v0  ;;  %295 = vmatprep.subr.mxu1 %v328_v0  ;;  %v21_v30 = vld [vmem:[%s504_s0] sm:$0xff]  ;;  %v117_v32 = vld [vmem:[%s503_s3 + $0x8] sm:$0xff] }
   0xc   :  { %263 = vmatpush3.msra.mxu0 %v32_v9  ;;  %296 = vmatpush3.msra.mxu1 %v127_v12  ;;  %v116_v33 = vld [vmem:[%s503_s3] sm:$0xff] }
   0xd   :  { %264 = vmatprep.subr.mxu0 %v328_v0  ;;  %297 = vmatprep.subr.mxu1 %v328_v0  ;;  %v216_v34 = vld [vmem:[%s505_s2] ss:$0 sm:$0xff] }
   0xe   :  { %265 = vmatpush3.msra.mxu0 %v31_v11  ;;  %298 = vmatpush3.msra.mxu1 %v126_v14 }
   0xf   :  { %266 = vmatprep.subr.mxu0 %v328_v0  ;;  %299 = vmatprep.subr.mxu1 %v328_v0 }
  0x10   :  { %267 = vmatpush3.msra.mxu0 %v30_v13  ;;  %300 = vmatpush3.msra.mxu1 %v125_v16 }
  0x11   :  { %268 = vmatprep.subr.mxu0 %v328_v0  ;;  %301 = vmatprep.subr.mxu1 %v328_v0 }
  0x12   :  { %269 = vmatpush3.msra.mxu0 %v29_v15  ;;  %302 = vmatpush3.msra.mxu1 %v124_v18 }
  0x13   :  { %270 = vmatprep.subr.mxu0 %v328_v0  ;;  %303 = vmatprep.subr.mxu1 %v328_v0 }
  0x14   :  { %271 = vmatpush3.msra.mxu0 %v28_v17  ;;  %304 = vmatpush3.msra.mxu1 %v123_v20 }
  0x15   :  { %272 = vmatprep.subr.mxu0 %v328_v0  ;;  %305 = vmatprep.subr.mxu1 %v328_v0 }
  0x16   :  { %273 = vmatpush3.msra.mxu0 %v27_v19  ;;  %306 = vmatpush3.msra.mxu1 %v122_v22 }
  0x17   :  { %274 = vmatprep.subr.mxu0 %v328_v0  ;;  %307 = vmatprep.subr.mxu1 %v328_v0 }
  0x18   :  { %275 = vmatpush3.msra.mxu0 %v26_v21  ;;  %308 = vmatpush3.msra.mxu1 %v121_v24 }
  0x19   :  { %276 = vmatprep.subr.mxu0 %v328_v0  ;;  %309 = vmatprep.subr.mxu1 %v328_v0 }
  0x1a   :  { %277 = vmatpush3.msra.mxu0 %v25_v23  ;;  %310 = vmatpush3.msra.mxu1 %v120_v26 }
  0x1b   :  { %278 = vmatprep.subr.mxu0 %v328_v0  ;;  %311 = vmatprep.subr.mxu1 %v328_v0 }
  0x1c   :  { %279 = vmatpush3.msra.mxu0 %v24_v25  ;;  %312 = vmatpush3.msra.mxu1 %v119_v28 }
  0x1d   :  { %280 = vmatprep.subr.mxu0 %v328_v0  ;;  %313 = vmatprep.subr.mxu1 %v328_v0 }
  0x1e   :  { %281 = vmatpush3.msra.mxu0 %v23_v27  ;;  %314 = vmatpush3.msra.mxu1 %v118_v31 }
  0x1f   :  { %282 = vmatprep.subr.mxu0 %v328_v0  ;;  %315 = vmatprep.subr.mxu1 %v328_v0 }
  0x20   :  { %283 = vmatpush3.msra.mxu0 %v22_v29  ;;  %316 = vmatpush3.msra.mxu1 %v117_v32 }
  0x21   :  { %285 = vmatmul.mubr.f32.vlgmr.msra.gmra.mxu0 %v21_v30  ;;  %317 = vmatprep.subr.mxu1 %v328_v0 }
  0x22   :  { %318 = vmatpush3.msra.mxu1 %v116_v33 }
  0xe1   :  { %v111_v35 = vpop.f32.mrf.mxu0 }
  0xe2   :  { %v112_v36 = vadd.f32 %v216_v34, %v111_v35 }
  0xe3   :  { %v286_v37 = vpop.f32.mrf.mxu0 }
  0xe4   :  { %v115_v38 = vmax.f32 %v112_v36, 0.0 }
  0xe6   :  { %320 = vmatmul.mubr.f32.vlgmr.msra.gmra.mxu1 %v115_v38 }
 0x1a6   :  { %v200_v40 = vpop.f32.mrf.mxu1 }
 0x1a7   :  { %v201_v41 = vadd.f32 %v200_v40, %v133_v39 }
 0x1a8   :  { %v321_v42 = vpop.f32.mrf.mxu1 }
 0x1a9   :  { %v217_v43 = vmul.f32 -1.442695, %v201_v41 }
 0x1ab   :  { %324 = vpow2.f32 %v217_v43 }
 0x1b8   :  { %v325_v44 = vpop.eup %324 }
 0x1b9   :  { %v207_v45 = vadd.f32 1.0, %v325_v44 }
 0x1bb   :  { %326 = vrcp.f32 %v207_v45 }
 0x1c8   :  { %v327_v46 = vpop.eup %326 }
 0x1c9   :  { %211 = vst.msk [vmem:[%s507_s5] sm:$0xff] %vm210_vm1, %v327_v46 }

</bundles_post_ra>
